<compile_context>
chip_gen: v6e
topology: v6e:2x2x1
jax: 0.10.0
libtpu: 0.0.40
codegen_flags: <defaults>
</compile_context>

<pallas_src>
import functools

import jax
import jax.numpy as jnp
from jax.experimental import pallas as pl
from jax.experimental.pallas import tpu as pltpu

BN_EPS = 1e-5
LANE = 128
SUBLANE = 8
VMEM_LIMIT = 32 * 1024 * 1024  # keep explicit: above v5e's 16 MiB scoped default


def _round_up(x, m):
    return ((x + m - 1) // m) * m


def _pad2d(a, shape):
    return jnp.pad(a, ((0, shape[0] - a.shape[0]), (0, shape[1] - a.shape[1])))


# ----------------------------------------------------------------------------
# Kernels
# ----------------------------------------------------------------------------
def _fused_single_block_kernel(x_ref, wf_ref, gamma_ref, beta_ref, w2t_ref,
                               bout_ref, o_ref, *, inv_b):
    """Whole forward in one block (small-batch path).

    x_ref  : [Bp, Ninp]        zero-padded batch rows / feature lanes
    wf_ref : [Ninp, 2*Np]      concat([W1^T, Ws^T], axis=1), zero-padded
    gamma_ref, beta_ref : [1, Np]
    w2t_ref: [Np, Np]
    bout_ref: [1, Np]          b2 + bs
    o_ref  : [Bp, Np]
    """
    n = o_ref.shape[-1]
    # Concat-then-slice is only free if the split lands on a lane-tile boundary.
    assert n % LANE == 0 and wf_ref.shape[-1] == 2 * n

    x = x_ref[...]
    fused = jnp.dot(x, wf_ref[...], preferred_element_type=jnp.float32)
    y1 = fused[:, :n]          # Linear1(x)   (b1 dropped: cancelled by BN mean)
    ys = fused[:, n:]          # shortcut(x)  (bias folded into bout)

    # Training-mode BatchNorm statistics. Padded batch rows of y1 are exactly
    # zero, so summing over all rows equals summing over real rows.
    s = jnp.sum(y1, axis=0, keepdims=True)
    sq = jnp.sum(y1 * y1, axis=0, keepdims=True)
    mean = s * inv_b
    var = jnp.maximum(sq * inv_b - mean * mean, 0.0)

    scale = gamma_ref[...] * jax.lax.rsqrt(var + BN_EPS)      # EUP
    shift = beta_ref[...] - mean * scale

    y_relu = jnp.maximum(y1 * scale + shift, 0.0)
    y2 = jnp.dot(y_relu, w2t_ref[...], preferred_element_type=jnp.float32)
    o_ref[...] = (y2 + ys + bout_ref[...]).astype(o_ref.dtype)


def _bn_stats_kernel(x_ref, w1t_ref, sum_ref, sq_ref):
    """Pass 1 (gridded path): accumulate batch sum / sum-sq of Linear1(x)."""
    bt = pl.program_id(0)

    @pl.when(bt == 0)
    def _():
        sum_ref[...] = jnp.zeros_like(sum_ref)
        sq_ref[...] = jnp.zeros_like(sq_ref)

    y1 = jnp.dot(x_ref[...], w1t_ref[...], preferred_element_type=jnp.float32)
    sum_ref[...] += jnp.sum(y1, axis=0, keepdims=True)
    sq_ref[...] += jnp.sum(y1 * y1, axis=0, keepdims=True)


def _bn_apply_kernel(x_ref, wf_ref, gamma_ref, beta_ref, w2t_ref, bout_ref,
                     sum_ref, sq_ref, o_ref, *, inv_b):
    """Pass 2 (gridded path): BN + ReLU + Linear2 + shortcut per batch tile."""
    n = o_ref.shape[-1]
    assert n % LANE == 0 and wf_ref.shape[-1] == 2 * n

    fused = jnp.dot(x_ref[...], wf_ref[...], preferred_element_type=jnp.float32)
    y1 = fused[:, :n]
    ys = fused[:, n:]

    mean = sum_ref[...] * inv_b
    var = jnp.maximum(sq_ref[...] * inv_b - mean * mean, 0.0)
    scale = gamma_ref[...] * jax.lax.rsqrt(var + BN_EPS)
    shift = beta_ref[...] - mean * scale

    y_relu = jnp.maximum(y1 * scale + shift, 0.0)
    y2 = jnp.dot(y_relu, w2t_ref[...], preferred_element_type=jnp.float32)
    o_ref[...] = (y2 + ys + bout_ref[...]).astype(o_ref.dtype)


# ----------------------------------------------------------------------------
# Wrapper: one-time parameter prep + jitted forward
# ----------------------------------------------------------------------------
def make_mifcnet_forward(params, *, batch_tile=256):
    """Builds a jitted forward(x) with all weight-side prep hoisted out."""
    n_input, n_units = params["w1t"].shape
    n_in_p = _round_up(n_input, LANE)
    n_up = _round_up(n_units, LANE)
    assert n_up % LANE == 0 and n_in_p % LANE == 0
    assert batch_tile % SUBLANE == 0

    # --- one-time weight-side preprocessing (NOT in the per-forward path) ---
    w1t_p = _pad2d(params["w1t"].astype(jnp.float32), (n_in_p, n_up))
    wst_p = _pad2d(params["wst"].astype(jnp.float32), (n_in_p, n_up))
    w_fused = jnp.concatenate([w1t_p, wst_p], axis=1)          # [n_in_p, 2*n_up]
    gamma_p = _pad2d(params["gamma"].astype(jnp.float32), (1, n_up))
    beta_p = _pad2d(params["beta"].astype(jnp.float32), (1, n_up))
    w2t_p = _pad2d(params["w2t"].astype(jnp.float32), (n_up, n_up))
    bout_p = _pad2d((params["b2"] + params["bs"]).astype(jnp.float32), (1, n_up))
    jax.block_until_ready((w1t_p, w_fused, gamma_p, beta_p, w2t_p, bout_p))

    vmem = pl.BlockSpec(memory_space=pltpu.MemorySpace.VMEM)

    @jax.jit
    def forward(x):
        B, n_in = x.shape
        assert n_in == n_input
        x = x.astype(jnp.float32)
        inv_b = 1.0 / B

        if B <= batch_tile:
            # ---- small-batch fast path: single fused block ----
            b_p = _round_up(max(B, SUBLANE), SUBLANE)
            x_p = _pad2d(x, (b_p, n_in_p))
            out_p = pl.pallas_call(
                functools.partial(_fused_single_block_kernel, inv_b=inv_b),
                out_shape=jax.ShapeDtypeStruct((b_p, n_up), jnp.float32),
                in_specs=[vmem] * 6,
                out_specs=vmem,
                compiler_params=pltpu.CompilerParams(
                    vmem_limit_bytes=VMEM_LIMIT),
            )(x_p, w_fused, gamma_p, beta_p, w2t_p, bout_p)
        else:
            # ---- large-batch path: batch-gridded two-pass BatchNorm ----
            b_p = _round_up(B, batch_tile)
            x_p = _pad2d(x, (b_p, n_in_p))
            nbt = b_p // batch_tile

            # Pass 1: batch statistics (reduction over batch -> "arbitrary").
            sums, sqs = pl.pallas_call(
                _bn_stats_kernel,
                out_shape=(jax.ShapeDtypeStruct((1, n_up), jnp.float32),
                           jax.ShapeDtypeStruct((1, n_up), jnp.float32)),
                grid=(nbt,),
                in_specs=[
                    pl.BlockSpec((batch_tile, n_in_p), lambda b: (b, 0)),
                    pl.BlockSpec((n_in_p, n_up), lambda b: (0, 0)),
                ],
                out_specs=(pl.BlockSpec((1, n_up), lambda b: (0, 0)),
                           pl.BlockSpec((1, n_up), lambda b: (0, 0))),
                compiler_params=pltpu.CompilerParams(
                    dimension_semantics=("arbitrary",),
                    vmem_limit_bytes=VMEM_LIMIT),
            )(x_p, w1t_p)

            # Pass 2: apply BN + ReLU + Linear2 + shortcut, batch "parallel"
            # (shards batch tiles across the 2 TensorCores on v7x).
            out_p = pl.pallas_call(
                functools.partial(_bn_apply_kernel, inv_b=inv_b),
                out_shape=jax.ShapeDtypeStruct((b_p, n_up), jnp.float32),
                grid=(nbt,),
                in_specs=[
                    pl.BlockSpec((batch_tile, n_in_p), lambda b: (b, 0)),
                    pl.BlockSpec((n_in_p, 2 * n_up), lambda b: (0, 0)),
                    pl.BlockSpec((1, n_up), lambda b: (0, 0)),
                    pl.BlockSpec((1, n_up), lambda b: (0, 0)),
                    pl.BlockSpec((n_up, n_up), lambda b: (0, 0)),
                    pl.BlockSpec((1, n_up), lambda b: (0, 0)),
                    pl.BlockSpec((1, n_up), lambda b: (0, 0)),
                    pl.BlockSpec((1, n_up), lambda b: (0, 0)),
                ],
                out_specs=pl.BlockSpec((batch_tile, n_up), lambda b: (b, 0)),
                compiler_params=pltpu.CompilerParams(
                    dimension_semantics=("parallel",),
                    vmem_limit_bytes=VMEM_LIMIT),
            )(x_p, w_fused, gamma_p, beta_p, w2t_p, bout_p, sums, sqs)

        return out_p[:B, :n_units]

    return forward


# ----------------------------------------------------------------------------
# Parameter init (matches MIFCNet.__init__ shapes) + pure-JAX reference
# ----------------------------------------------------------------------------
def init_params(key, n_input, n_units):
    assert n_units >= n_input
    ks = jax.random.split(key, 6)

    def linear_init(kw, kb, fan_in, fan_out):
        bound = 1.0 / jnp.sqrt(fan_in)
        w = jax.random.uniform(kw, (fan_out, fan_in), jnp.float32, -bound, bound)
        b = jax.random.uniform(kb, (fan_out,), jnp.float32, -bound, bound)
        return w, b

    # block_nonlinear: Linear(n_input,n_units), BN(n_units), ReLU, Linear(n_units,n_units)
    w1, b1 = linear_init(ks[0], ks[1], n_input, n_units)
    w2, b2 = linear_init(ks[2], ks[3], n_units, n_units)

    # linear_shortcut: uniform(-0.01, 0.01) then diagonal forced to 1.0
    ws = jax.random.uniform(ks[4], (n_units, n_input), jnp.float32, -0.01, 0.01)
    eye_mask = jnp.zeros((n_units, n_input), dtype=bool)
    eye_mask = eye_mask.at[jnp.arange(n_input), jnp.arange(n_input)].set(True)
    ws = jnp.where(eye_mask, 1.0, ws)
    bound_s = 1.0 / jnp.sqrt(n_input)
    bs = jax.random.uniform(ks[5], (n_units,), jnp.float32, -bound_s, bound_s)

    gamma = jnp.ones((n_units,), jnp.float32)
    beta = jnp.zeros((n_units,), jnp.float32)

    return {
        "w1t": w1.T, "b1": b1.reshape(1, n_units),
        "gamma": gamma.reshape(1, n_units), "beta": beta.reshape(1, n_units),
        "w2t": w2.T, "b2": b2.reshape(1, n_units),
        "wst": ws.T, "bs": bs.reshape(1, n_units),
    }


def mifcnet_reference(x, params):
    """Pure-JAX reference matching the PyTorch module (training-mode BN)."""
    with jax.default_matmul_precision("highest"):
        y1 = x @ params["w1t"] + params["b1"]
        mean = jnp.mean(y1, axis=0, keepdims=True)
        var = jnp.mean((y1 - mean) ** 2, axis=0, keepdims=True)
        y_bn = (y1 - mean) / jnp.sqrt(var + BN_EPS) * params["gamma"] + params["beta"]
        y2 = jnp.maximum(y_bn, 0.0) @ params["w2t"] + params["b2"]
        ys = x @ params["wst"] + params["bs"]
        return y2 + ys


if __name__ == "__main__":
    key = jax.random.PRNGKey(0)
    k_x1, k_p1, k_x2, k_p2 = jax.random.split(key, 4)

    # --- small-batch single-block path ---
    B, n_input, n_units = 8, 16, 32
    params = init_params(k_p1, n_input, n_units)
    x = jax.random.normal(k_x1, (B, n_input), jnp.float32)
    fwd = make_mifcnet_forward(params)
    out = jax.block_until_ready(fwd(x))
    ref = mifcnet_reference(x, params)
    assert out.shape == (B, n_units)
    assert jnp.allclose(out, ref, atol=1e-3, rtol=1e-3), "single-block mismatch"

    # --- batch-gridded two-pass-BN path (batch not a tile multiple on purpose) ---
    B2, n_input2, n_units2 = 200, 64, 128
    params2 = init_params(k_p2, n_input2, n_units2)
    x2 = jax.random.normal(k_x2, (B2, n_input2), jnp.float32)
    fwd2 = make_mifcnet_forward(params2, batch_tile=64)
    out2 = jax.block_until_ready(fwd2(x2))
    ref2 = mifcnet_reference(x2, params2)
    assert out2.shape == (B2, n_units2)
    assert jnp.allclose(out2, ref2, atol=1e-3, rtol=1e-3), "gridded mismatch"

    print("KERNEL_OK")
</pallas_src>

<mosaic_0001>
module attributes {stable_mosaic.version = 11 : i64} {
  func.func @_fused_single_block_kernel(%arg0: memref<8x128xf32, #tpu.memory_space<vmem>>, %arg1: memref<128x256xf32, #tpu.memory_space<vmem>>, %arg2: memref<1x128xf32, #tpu.memory_space<vmem>>, %arg3: memref<1x128xf32, #tpu.memory_space<vmem>>, %arg4: memref<128x128xf32, #tpu.memory_space<vmem>>, %arg5: memref<1x128xf32, #tpu.memory_space<vmem>>, %arg6: memref<8x128xf32, #tpu.memory_space<vmem>>) attributes {dimension_semantics = [], scalar_prefetch = 0 : i64, scratch_operands = 0 : i64, tpu.core_type = #tpu.core_type<tc>} {
    %c0 = arith.constant 0 : index
    %c0_0 = arith.constant 0 : index
    %0 = vector.load %arg0[%c0, %c0_0] : memref<8x128xf32, #tpu.memory_space<vmem>>, vector<8x128xf32>
    %c0_1 = arith.constant 0 : index
    %c0_2 = arith.constant 0 : index
    %1 = vector.load %arg1[%c0_1, %c0_2] : memref<128x256xf32, #tpu.memory_space<vmem>>, vector<128x256xf32>
    %cst = arith.constant dense<0.000000e+00> : vector<8x256xf32>
    %2 = tpu.matmul %0, %1, %cst {dimension_numbers = #tpu.dot_dimension_numbers<[1], [0], [0], [1], [0, 0, 1, 1], [], []>} : vector<8x128xf32>, vector<128x256xf32>, vector<8x256xf32> -> vector<8x256xf32>
    %3 = vector.extract_strided_slice %2 {offsets = [0, 0], sizes = [8, 128], strides = [1, 1]} : vector<8x256xf32> to vector<8x128xf32>
    %4 = vector.extract_strided_slice %2 {offsets = [0, 128], sizes = [8, 128], strides = [1, 1]} : vector<8x256xf32> to vector<8x128xf32>
    %cst_3 = arith.constant dense<0.000000e+00> : vector<128xf32>
    %5 = vector.multi_reduction <add>, %3, %cst_3 [0] : vector<8x128xf32> to vector<128xf32>
    %6 = vector.shape_cast %5 : vector<128xf32> to vector<1x128xf32>
    %7 = arith.mulf %3, %3 : vector<8x128xf32>
    %cst_4 = arith.constant dense<0.000000e+00> : vector<128xf32>
    %8 = vector.multi_reduction <add>, %7, %cst_4 [0] : vector<8x128xf32> to vector<128xf32>
    %9 = vector.shape_cast %8 : vector<128xf32> to vector<1x128xf32>
    %cst_5 = arith.constant 1.250000e-01 : f32
    %10 = vector.broadcast %cst_5 : f32 to vector<1x128xf32>
    %11 = arith.mulf %6, %10 : vector<1x128xf32>
    %cst_6 = arith.constant 1.250000e-01 : f32
    %12 = vector.broadcast %cst_6 : f32 to vector<1x128xf32>
    %13 = arith.mulf %9, %12 : vector<1x128xf32>
    %14 = arith.mulf %11, %11 : vector<1x128xf32>
    %15 = arith.subf %13, %14 : vector<1x128xf32>
    %cst_7 = arith.constant 0.000000e+00 : f32
    %16 = vector.broadcast %cst_7 : f32 to vector<1x128xf32>
    %17 = arith.maximumf %15, %16 : vector<1x128xf32>
    %c0_8 = arith.constant 0 : index
    %c0_9 = arith.constant 0 : index
    %18 = vector.load %arg2[%c0_8, %c0_9] : memref<1x128xf32, #tpu.memory_space<vmem>>, vector<1x128xf32>
    %cst_10 = arith.constant 9.99999974E-6 : f32
    %19 = vector.broadcast %cst_10 : f32 to vector<1x128xf32>
    %20 = arith.addf %17, %19 : vector<1x128xf32>
    %21 = math.rsqrt %20 : vector<1x128xf32>
    %22 = arith.mulf %18, %21 : vector<1x128xf32>
    %c0_11 = arith.constant 0 : index
    %c0_12 = arith.constant 0 : index
    %23 = vector.load %arg3[%c0_11, %c0_12] : memref<1x128xf32, #tpu.memory_space<vmem>>, vector<1x128xf32>
    %24 = arith.mulf %11, %22 : vector<1x128xf32>
    %25 = arith.subf %23, %24 : vector<1x128xf32>
    %26 = vector.broadcast %22 : vector<1x128xf32> to vector<8x128xf32>
    %27 = arith.mulf %3, %26 : vector<8x128xf32>
    %28 = vector.broadcast %25 : vector<1x128xf32> to vector<8x128xf32>
    %29 = arith.addf %27, %28 : vector<8x128xf32>
    %cst_13 = arith.constant 0.000000e+00 : f32
    %30 = vector.broadcast %cst_13 : f32 to vector<8x128xf32>
    %31 = arith.maximumf %29, %30 : vector<8x128xf32>
    %c0_14 = arith.constant 0 : index
    %c0_15 = arith.constant 0 : index
    %32 = vector.load %arg4[%c0_14, %c0_15] : memref<128x128xf32, #tpu.memory_space<vmem>>, vector<128x128xf32>
    %cst_16 = arith.constant dense<0.000000e+00> : vector<8x128xf32>
    %33 = tpu.matmul %31, %32, %cst_16 {dimension_numbers = #tpu.dot_dimension_numbers<[1], [0], [0], [1], [0, 0, 1, 1], [], []>} : vector<8x128xf32>, vector<128x128xf32>, vector<8x128xf32> -> vector<8x128xf32>
    %34 = arith.addf %33, %4 : vector<8x128xf32>
    %c0_17 = arith.constant 0 : index
    %c0_18 = arith.constant 0 : index
    %35 = vector.load %arg5[%c0_17, %c0_18] : memref<1x128xf32, #tpu.memory_space<vmem>>, vector<1x128xf32>
    %36 = vector.broadcast %35 : vector<1x128xf32> to vector<8x128xf32>
    %37 = arith.addf %34, %36 : vector<8x128xf32>
    %c0_19 = arith.constant 0 : index
    %c0_20 = arith.constant 0 : index
    %38 = vector.load %arg6[%c0_19, %c0_20] : memref<8x128xf32, #tpu.memory_space<vmem>>, vector<8x128xf32>
    tpu.vector_store %arg6[%c0_19, %c0_20], %37 {strides = array<i32>} : memref<8x128xf32, #tpu.memory_space<vmem>>, vector<8x128xf32>,
    return
  }
}

</mosaic_0001>

<bundles_post_ra>
// kernel: forward.1
= control target key start
LH: loop header
LB: loop body
LE: loop exit
PB: predicated region body
PF: predicated region fallthrough
CT: control target
= control target key end

     0   :  { %11 = vsyncpa [#allocation3], 0  ;;  %s520_s0 = inlined_call_operand.vmem [shape: f32[8,128], index: 0, kind: input, shape index: {}]   ;;  %s521_s1 = inlined_call_operand.hbm [shape: f32[128,256], index: 1, kind: input, shape index: {}]   ;;  %s522_s2 = inlined_call_operand.vmem [shape: f32[1,128], index: 2, kind: input, shape index: {}]   ;;  %s523_s3 = inlined_call_operand.vmem [shape: f32[1,128], index: 3, kind: input, shape index: {}]   ;;  %s524_s4 = inlined_call_operand.hbm [shape: f32[128,128], index: 4, kind: input, shape index: {}]   ;;  %s525_s5 = inlined_call_operand.vmem [shape: f32[1,128], index: 5, kind: input, shape index: {}]   ;;  %s526_s6 = inlined_call_operand.hbm [shape: f32[8,128], index: 6, kind: output, shape index: {}]  }
   0x1   :  { %12 = vsyncpa [#allocation6], 0 }
   0x2   :  { %13 = vsyncpa [#allocation4], 0  ;;  %s437_s21 = smov [#allocation2]  }
   0x3   :  { %s21_s22 = sshll.u32 %s437_s21, 4  ;;  %s22_s22 = int_to_ptr.vmem [resolvable:$true] %s21_s22 }
   0x4   :  { %s379_s23 = scalar_lea.vmem %s22_s22, 4096  ;;  %p384_p1 = scmp.lt.s32.totalorder %s22_s22, %s22_s22 }
   0x5   :  { %p380_p0 = scmp.ne.s32.totalorder %s22_s22, %s379_s23  ;;  %p385_p2 = scmp.lt.s32.totalorder %s379_s23, %s379_s23 }
   0x7   :  { %p386_p3 = por %p385_p2, %p384_p1 }
   0x9   :  { %p387_p4 = pnand %p386_p3, %p380_p0 }
   0xb   :  { %390 = shalt.err (!%p387_p4)
}
   0xc   :  { %s438_s24 = smov 256   ;;  %s439_s25 = smov 16  }
   0xd   :  { %27 = dma.hbm_to_vmem [thread:$0]  %s521_s1, 4096, %s22_s22, [#allocation3], %s438_s24, %s438_s24, %s439_s25  }
   0xe   :  { %s440_s28 = smov [#allocation5]  }
   0xf   :  { %s37_s29 = sshll.u32 %s440_s28, 4  ;;  %s38_s29 = int_to_ptr.vmem [resolvable:$true] %s37_s29 }
  0x10   :  { %s399_s30 = scalar_lea.vmem %s38_s29, 2048  ;;  %p404_p6 = scmp.lt.s32.totalorder %s38_s29, %s38_s29 }
  0x11   :  { %p400_p5 = scmp.ne.s32.totalorder %s38_s29, %s399_s30  ;;  %p405_p7 = scmp.lt.s32.totalorder %s399_s30, %s399_s30 }
  0x13   :  { %p406_p8 = por %p405_p7, %p404_p6 }
  0x15   :  { %p407_p9 = pnand %p406_p8, %p400_p5 }
  0x17   :  { %410 = shalt.err (!%p407_p9)
}
  0x18   :  { %s441_s7 = smov 128   ;;  %s442_s8 = smov 8  }
  0x19   :  { %43 = dma.hbm_to_vmem [thread:$0]  %s524_s4, 2048, %s38_s29, [#allocation6], %s441_s7, %s441_s7, %s442_s8  }
  0x1a   :  { %431 = dma.done.wait [#allocation3], 4096  }
  0x1b   :  { %432 = vsyncadd [#allocation3], 4294963200 }
  0x1c   :  { %433 = dma.done.wait [#allocation6], 2048  }
  0x1d   :  { %434 = vsyncadd [#allocation6], 4294965248  ;;  %v443_v0 = vmov 0.0   ;;  %v84_v1 = vld [vmem:[#allocation2 + $0xf8] sm:$0xff]  ;;  %v83_v2 = vld [vmem:[#allocation2 + $0xf0] sm:$0xff]  ;;  %vm444_vm0 = vmmov 0  }
  0x1e   :  { %149 = vmatprep.mubr.f32.mxu0 %v443_v0  ;;  %325 = vmatprep.subr.mxu1 %v443_v0  ;;  %v82_v3 = vld [vmem:[#allocation2 + $0xe8] sm:$0xff]  ;;  %v81_v4 = vld [vmem:[#allocation2 + $0xe0] sm:$0xff]  ;;  %v80_v5 = vld [vmem:[#allocation2 + $0xd8] sm:$0xff] }
  0x1f   :  { %85 = vmatprep.subr.mxu0 %v84_v1  ;;  %v79_v6 = vld [vmem:[#allocation2 + $0xd0] sm:$0xff]  ;;  %v78_v7 = vld [vmem:[#allocation2 + $0xc8] sm:$0xff]  ;;  %v77_v8 = vld [vmem:[#allocation2 + $0xc0] sm:$0xff]  ;;  %357 = vmatprep.mubr.msk.f32.mxu1 %vm444_vm0, %v443_v0 }
  0x20   :  { %86 = vmatpush1.msra.mxu0 %v83_v2  ;;  %v76_v9 = vld [vmem:[#allocation2 + $0xb8] sm:$0xff]  ;;  %v75_v10 = vld [vmem:[#allocation2 + $0xb0] sm:$0xff]  ;;  %v74_v11 = vld [vmem:[#allocation2 + $0xa8] sm:$0xff] }
  0x21   :  { %87 = vmatprep.subr.mxu0 %v82_v3  ;;  %v73_v12 = vld [vmem:[#allocation2 + $0xa0] sm:$0xff]  ;;  %v72_v13 = vld [vmem:[#allocation2 + $0x98] sm:$0xff]  ;;  %v71_v14 = vld [vmem:[#allocation2 + $0x90] sm:$0xff] }
  0x22   :  { %88 = vmatpush1.msra.mxu0 %v81_v4  ;;  %v70_v15 = vld [vmem:[#allocation2 + $0x88] sm:$0xff]  ;;  %v69_v16 = vld [vmem:[#allocation2 + $0x80] sm:$0xff]  ;;  %v68_v17 = vld [vmem:[#allocation2 + $0x78] sm:$0xff] }
  0x23   :  { %89 = vmatprep.subr.mxu0 %v80_v5  ;;  %v67_v18 = vld [vmem:[#allocation2 + $0x70] sm:$0xff]  ;;  %v66_v19 = vld [vmem:[#allocation2 + $0x68] sm:$0xff]  ;;  %v65_v20 = vld [vmem:[#allocation2 + $0x60] sm:$0xff] }
  0x24   :  { %90 = vmatpush1.msra.mxu0 %v79_v6  ;;  %v64_v21 = vld [vmem:[#allocation2 + $0x58] sm:$0xff]  ;;  %v63_v22 = vld [vmem:[#allocation2 + $0x50] sm:$0xff]  ;;  %v62_v23 = vld [vmem:[#allocation2 + $0x48] sm:$0xff]  ;;  %v182_v6 = vlaneseq }
  0x25   :  { %91 = vmatprep.subr.mxu0 %v78_v7  ;;  %v61_v24 = vld [vmem:[#allocation2 + $0x40] sm:$0xff]  ;;  %v60_v25 = vld [vmem:[#allocation2 + $0x38] sm:$0xff]  ;;  %v59_v26 = vld [vmem:[#allocation2 + $0x30] sm:$0xff] }
  0x26   :  { %92 = vmatpush1.msra.mxu0 %v77_v8  ;;  %v58_v27 = vld [vmem:[#allocation2 + $0x28] sm:$0xff]  ;;  %v57_v28 = vld [vmem:[#allocation2 + $0x20] sm:$0xff]  ;;  %v56_v29 = vld [vmem:[#allocation2 + $0x18] sm:$0xff]  ;;  %v183_v7 = vshrl.u32 %v182_v6, 7 }
  0x27   :  { %93 = vmatprep.subr.mxu0 %v76_v9  ;;  %v55_v30 = vld [vmem:[#allocation2 + $0x10] sm:$0xff]  ;;  %v54_v31 = vld [vmem:[#allocation2 + $0x8] sm:$0xff]  ;;  %v53_v32 = vld [vmem:[#allocation2] sm:$0xff] }
  0x28   :  { %94 = vmatpush1.msra.mxu0 %v75_v10  ;;  %v52_v33 = vld [vmem:[%s520_s0] sm:$0xff]  ;;  %v211_v34 = vld [vmem:[#allocation5 + $0x78] sm:$0xff]  ;;  %v210_v35 = vld [vmem:[#allocation5 + $0x70] sm:$0xff]  ;;  %v184_v9 = vsub.s32 0, %v183_v7 }
  0x29   :  { %95 = vmatprep.subr.mxu0 %v74_v11  ;;  %326 = vmatpush3.msra.mxu1 %v211_v34  ;;  %v209_v36 = vld [vmem:[#allocation5 + $0x68] sm:$0xff]  ;;  %v208_v37 = vld [vmem:[#allocation5 + $0x60] sm:$0xff]  ;;  %v207_v38 = vld [vmem:[#allocation5 + $0x58] sm:$0xff] }
  0x2a   :  { %96 = vmatpush1.msra.mxu0 %v73_v12  ;;  %327 = vmatprep.subr.mxu1 %v443_v0  ;;  %v206_v39 = vld [vmem:[#allocation5 + $0x50] sm:$0xff]  ;;  %v205_v40 = vld [vmem:[#allocation5 + $0x48] sm:$0xff]  ;;  %v204_v41 = vld [vmem:[#allocation5 + $0x40] sm:$0xff] }
  0x2b   :  { %97 = vmatprep.subr.mxu0 %v72_v13  ;;  %328 = vmatpush3.msra.mxu1 %v210_v35  ;;  %v203_v42 = vld [vmem:[#allocation5 + $0x38] sm:$0xff]  ;;  %v202_v43 = vld [vmem:[#allocation5 + $0x30] sm:$0xff]  ;;  %v201_v44 = vld [vmem:[#allocation5 + $0x28] sm:$0xff] }
  0x2c   :  { %98 = vmatpush1.msra.mxu0 %v71_v14  ;;  %329 = vmatprep.subr.mxu1 %v443_v0  ;;  %v200_v45 = vld [vmem:[#allocation5 + $0x20] sm:$0xff]  ;;  %v199_v46 = vld [vmem:[#allocation5 + $0x18] sm:$0xff]  ;;  %v198_v47 = vld [vmem:[#allocation5 + $0x10] sm:$0xff] }
  0x2d   :  { %99 = vmatprep.subr.mxu0 %v70_v15  ;;  %330 = vmatpush3.msra.mxu1 %v209_v36  ;;  %v197_v48 = vld [vmem:[#allocation5 + $0x8] sm:$0xff]  ;;  %v196_v49 = vld [vmem:[#allocation5] sm:$0xff] }
  0x2e   :  { %100 = vmatpush1.msra.mxu0 %v69_v16  ;;  %331 = vmatprep.subr.mxu1 %v443_v0  ;;  %v174_v8 = vld [vmem:[%s522_s2] sm:$0x1]  ;;  %s445_s2 = smov [#allocation7]  }
  0x2f   :  { %101 = vmatprep.subr.mxu0 %v68_v17  ;;  %332 = vmatpush3.msra.mxu1 %v208_v37  ;;  %v178_v12 = vld [vmem:[%s523_s3] sm:$0x1]  ;;  %s297_s16 = sshll.u32 %s445_s2, 4  ;;  %s298_s16 = int_to_ptr.vmem [resolvable:$true] %s297_s16 }
  0x30   :  { %102 = vmatpush1.msra.mxu0 %v67_v18  ;;  %333 = vmatprep.subr.mxu1 %v443_v0  ;;  %s411_s3 = scalar_lea.vmem %s298_s16, 128  ;;  %p416_p11 = scmp.lt.s32.totalorder %s298_s16, %s298_s16 }
  0x31   :  { %103 = vmatprep.subr.mxu0 %v66_v19  ;;  %334 = vmatpush3.msra.mxu1 %v207_v38  ;;  %p412_p10 = scmp.ne.s32.totalorder %s298_s16, %s411_s3  ;;  %p417_p12 = scmp.lt.s32.totalorder %s411_s3, %s411_s3 }
  0x32   :  { %104 = vmatpush1.msra.mxu0 %v65_v20  ;;  %335 = vmatprep.subr.mxu1 %v443_v0 }
  0x33   :  { %105 = vmatprep.subr.mxu0 %v64_v21  ;;  %336 = vmatpush3.msra.mxu1 %v206_v39  ;;  %p418_p13 = por %p417_p12, %p416_p11 }
  0x34   :  { %106 = vmatpush1.msra.mxu0 %v63_v22  ;;  %337 = vmatprep.subr.mxu1 %v443_v0  ;;  %v307_v22 = vld [vmem:[%s525_s5] ss:$0 sm:$0xff] }
  0x35   :  { %107 = vmatprep.subr.mxu0 %v62_v23  ;;  %338 = vmatpush3.msra.mxu1 %v205_v40  ;;  %p419_p0 = pnand %p418_p13, %p412_p10 }
  0x36   :  { %108 = vmatpush1.msra.mxu0 %v61_v24  ;;  %339 = vmatprep.subr.mxu1 %v443_v0 }
  0x37   :  { %109 = vmatprep.subr.mxu0 %v60_v25  ;;  %340 = vmatpush3.msra.mxu1 %v204_v41 }
  0x38   :  { %110 = vmatpush1.msra.mxu0 %v59_v26  ;;  %341 = vmatprep.subr.mxu1 %v443_v0 }
  0x39   :  { %111 = vmatprep.subr.mxu0 %v58_v27  ;;  %342 = vmatpush3.msra.mxu1 %v203_v42 }
  0x3a   :  { %112 = vmatpush1.msra.mxu0 %v57_v28  ;;  %343 = vmatprep.subr.mxu1 %v443_v0 }
  0x3b   :  { %113 = vmatprep.subr.mxu0 %v56_v29  ;;  %344 = vmatpush3.msra.mxu1 %v202_v43 }
  0x3c   :  { %114 = vmatpush1.msra.mxu0 %v55_v30  ;;  %345 = vmatprep.subr.mxu1 %v443_v0 }
  0x3d   :  { %115 = vmatprep.subr.mxu0 %v54_v31  ;;  %346 = vmatpush3.msra.mxu1 %v201_v44 }
  0x3e   :  { %116 = vmatpush1.msra.mxu0 %v53_v32  ;;  %347 = vmatprep.subr.mxu1 %v443_v0 }
  0x3f   :  { %150 = vmatmul.mubr.f32.vlgmr.msra.gmra.mxu0 %v52_v33  ;;  %348 = vmatpush3.msra.mxu1 %v200_v45 }
  0x40   :  { %349 = vmatprep.subr.mxu1 %v443_v0 }
  0x41   :  { %350 = vmatpush3.msra.mxu1 %v199_v46 }
  0x42   :  { %351 = vmatprep.subr.mxu1 %v443_v0 }
  0x43   :  { %352 = vmatpush3.msra.mxu1 %v198_v47 }
  0x44   :  { %353 = vmatprep.subr.mxu1 %v443_v0 }
  0x45   :  { %354 = vmatpush3.msra.mxu1 %v197_v48 }
  0x46   :  { %355 = vmatprep.subr.mxu1 %v443_v0 }
  0x47   :  { %356 = vmatpush3.msra.mxu1 %v196_v49 }
  0xff   :  { %v151_v50 = vpop.f32.mrf.mxu0 }
 0x100   :  { %v156_v51 = vrot.slane %v151_v50, 4  ;;  %v162_v52 = vmul.f32 %v151_v50, %v151_v50 }
 0x101   :  { %v153_v20 = vpop.f32.mrf.mxu0 }
 0x102   :  { %v157_v53 = vadd.f32 %v156_v51, %v151_v50  ;;  %v163_v54 = vrot.slane %v162_v52, 4 }
 0x104   :  { %v158_v55 = vrot.slane %v157_v53, 2  ;;  %v164_v56 = vadd.f32 %v163_v54, %v162_v52 }
 0x106   :  { %v159_v57 = vadd.f32 %v158_v55, %v157_v53  ;;  %v165_v58 = vrot.slane %v164_v56, 2 }
 0x108   :  { %v160_v59 = vrot.slane %v159_v57, 1  ;;  %v166_v60 = vadd.f32 %v165_v58, %v164_v56 }
 0x10a   :  { %v161_v61 = vadd.f32 %v160_v59, %v159_v57  ;;  %v167_v62 = vrot.slane %v166_v60, 1 }
 0x10c   :  { %v168_v63 = vadd.f32 %v167_v62, %v166_v60  ;;  %v169_v1 = vmul.f32 0.125, %v161_v61 }
 0x10e   :  { %v170_v2 = vmul.f32 0.125, %v168_v63  ;;  %v171_v3 = vmul.f32 %v169_v1, %v169_v1 }
 0x110   :  { %v172_v4 = vsub.f32 %v170_v2, %v171_v3 }
 0x112   :  { %v173_v0 = vmax.f32 %v172_v4, 0.0 }
 0x114   :  { %v175_v5 = vadd.f32 1e-05, %v173_v0 }
 0x116   :  { %369 = vrsqrt.f32 %v175_v5 }
 0x123   :  { %v370_v10 = vpop.eup %369 }
 0x124   :  { %v177_v11 = vmul.f32 %v370_v10, %v174_v8 }
 0x126   :  { %v185_v13 = vrot.slane %v177_v11, %v184_v9  ;;  %v179_v14 = vmul.f32 %v177_v11, %v169_v1 }
 0x128   :  { %v180_v15 = vsub.f32 %v178_v12, %v179_v14  ;;  %v187_v16 = vmul.f32 %v185_v13, %v151_v50 }
 0x12a   :  { %v192_v17 = vrot.slane %v180_v15, %v184_v9 }
 0x12c   :  { %v194_v18 = vadd.f32 %v192_v17, %v187_v16 }
 0x12e   :  { %v195_v19 = vmax.f32 %v194_v18, 0.0 }
 0x130   :  { %358 = vmatmul.mubr.f32.vlgmr.msra.gmra.mxu1 %v195_v19 }
 0x1f0   :  { %v278_v21 = vpop.f32.mrf.mxu1 }
 0x1f1   :  { %v279_v23 = vadd.f32 %v278_v21, %v153_v20 }
 0x1f2   :  { %v359_v24 = vpop.f32.mrf.mxu1 }
 0x1f3   :  { %v289_v25 = vadd.f32 %v307_v22, %v279_v23 }
 0x1f5   :  { %290 = vst [vmem:[#allocation7] sm:$0xff] %v289_v25 }
 0x1f6   :  { %422 = shalt.err (!%p419_p0)
}
 0x1f7   :  { %300 = dma.vmem_to_hbm [thread:$0]  %s298_s16, 128, %s526_s6, [#allocation4]  }
 0x1f8   :  { %435 = dma.done.wait [#allocation4], 128  }
 0x1f9   :  { %436 = vsyncadd [#allocation4], 4294967168 }
 0x1fa   :  { %304 = vsyncpa [#allocation3], 1 }
 0x1fb   :  { %305 = vsyncpa [#allocation6], 1 }
 0x1fc   :  { %306 = vsyncpa [#allocation4], 1 }

</bundles_post_ra>
